<compile_context>
chip_gen: v6e
topology: v6e:2x2x1
jax: 0.10.0
libtpu: 0.0.40
codegen_flags: <defaults>
</compile_context>

<pallas_src>
import jax
import jax.numpy as jnp
from jax.experimental import pallas as pl
from jax.experimental.pallas import tpu as pltpu

LANE = 128  # lane width (last dim of vreg)


def _round_up(x, m):
    return ((x + m - 1) // m) * m


def _cdiv(a, b):
    return (a + b - 1) // b


def _pair(v):
    if isinstance(v, (tuple, list)):
        return int(v[0]), int(v[1])
    return int(v), int(v)


def conv_relu_kernel(p_ref, w_ref, b_ref, o_ref):
    """One grid step = one M-tile of the im2col matmul.

    p_ref : (TM, Kp)        im2col rows for this tile (zero-padded contraction)
    w_ref : (Kp, Cout_p)    full flattened weights (resident across tiles)
    b_ref : (1, Cout_p)     bias (zero-padded)
    o_ref : (TM, Cout_p)    output tile
    """
    acc = jnp.dot(p_ref[...], w_ref[...], preferred_element_type=jnp.float32)
    acc = acc + b_ref[...].astype(jnp.float32)
    o_ref[...] = jnp.maximum(acc, 0.0).astype(o_ref.dtype)


def zfnet_conv(x, weight, bias, stride, padding, *, tile_m=1024,
               compute_dtype=None):
    """Conv2d(bias=True) + ReLU, matching PyTorch nn.Conv2d semantics.

    x      : (N, Cin, H, W)      NCHW (PyTorch convention)
    weight : (Cout, Cin, KH, KW) PyTorch convention
    bias   : (Cout,)
    compute_dtype : dtype used for the MXU operands (e.g. jnp.bfloat16 to
                    halve DMA bytes); accumulation is always f32 and the
                    output keeps x.dtype.
    """
    N, Cin, H, W = x.shape
    Cout, _, KH, KW = weight.shape
    sh, sw = _pair(stride)
    ph, pw = _pair(padding)
    Ho = (H + 2 * ph - KH) // sh + 1
    Wo = (W + 2 * pw - KW) // sw + 1
    M = N * Ho * Wo
    Keff = KH * KW * Cin

    out_dtype = x.dtype
    c_dtype = jnp.dtype(compute_dtype) if compute_dtype is not None else jnp.dtype(x.dtype)
    c_item = c_dtype.itemsize
    o_item = jnp.dtype(out_dtype).itemsize

    # Minimum sublane granule for the compute dtype (f32: 8, bf16: 16, int8: 32).
    SUB = {4: 8, 2: 16, 1: 32}.get(c_item, 8)

    # Contraction dim: only sublane-rounded (blocks span the full K axis, so
    # no 128-lane padding is required) -> much less patch HBM traffic.
    Kp = _round_up(Keff, SUB)
    Cout_p = _round_up(Cout, LANE)      # lane-dense output stores

    # ---- tile-size selection ---------------------------------------------
    # Balance TM against M (avoid a nearly-empty trailing tile) and keep at
    # least two grid steps so both v7x TensorCores get work.
    min_steps = 2 if M > SUB else 1
    num_steps = max(_cdiv(M, tile_m), min_steps)
    TM = _round_up(_cdiv(M, num_steps), SUB)

    # ---- generation-aware VMEM budget ------------------------------------
    try:
        info = pltpu.get_tpu_info()
        phys_vmem = int(getattr(info, "vmem_capacity_bytes", 64 << 20))
    except Exception:
        phys_vmem = 64 << 20            # conservative (v7x per-core VMEM)
    vmem_cap = (phys_vmem * 3) // 4

    def _budget(tm):
        # Conservatively count every pipelined block double-buffered
        # (weights/bias included: default pipelining allocates 2 buffers
        # even with a constant index_map).
        return (2 * tm * Kp * c_item          # patch tile
                + 2 * Kp * Cout_p * c_item    # weights
                + 2 * Cout_p * c_item         # bias
                + 2 * tm * Cout_p * o_item    # output tile
                + (2 << 20))                  # compiler scratch slack

    # Never clamp the limit below the working set: shrink TM instead.
    while _budget(TM) > vmem_cap and TM > SUB:
        TM = max(SUB, _round_up(TM // 2, SUB))

    Mp = _round_up(M, TM)
    grid_m = Mp // TM
    vmem_limit = int(min(max(_budget(TM), 16 << 20), vmem_cap))

    # ---- glue: layout conversion + zero padding + im2col (M, K*Cin) -------
    x_nhwc = jnp.transpose(x, (0, 2, 3, 1))                        # (N, H, W, Cin)
    x_pad = jnp.pad(x_nhwc, ((0, 0), (ph, ph), (pw, pw), (0, 0)))
    x_pad = x_pad.astype(c_dtype)                                  # im2col in compute dtype

    cols = []
    for kh in range(KH):
        for kw in range(KW):
            p = jax.lax.slice(
                x_pad,
                (0, kh, kw, 0),
                (N, kh + sh * (Ho - 1) + 1, kw + sw * (Wo - 1) + 1, Cin),
                (1, sh, sw, 1))                                    # (N, Ho, Wo, Cin)
            cols.append(p.reshape(M, Cin))
    patches = jnp.concatenate(cols, axis=1)                        # (M, K*Cin)
    patches = jnp.pad(patches, ((0, Mp - M), (0, Kp - Keff)))      # (Mp, Kp)

    # Weights flattened to (K*Cin, Cout) in matching (kh, kw, cin) order.
    w2 = jnp.transpose(weight, (2, 3, 1, 0)).reshape(Keff, Cout)
    w2 = jnp.pad(w2, ((0, Kp - Keff), (0, Cout_p - Cout))).astype(c_dtype)
    b2 = jnp.pad(bias, (0, Cout_p - Cout)).reshape(1, Cout_p).astype(c_dtype)

    cost = pl.CostEstimate(
        flops=2 * M * Cout * Keff,
        transcendentals=0,
        bytes_accessed=((Mp * Kp + Kp * Cout_p + Cout_p) * c_item
                        + Mp * Cout_p * o_item))

    # ---- hot path: one lane-dense matmul + bias + ReLU per M-tile ---------
    out2d = pl.pallas_call(
        conv_relu_kernel,
        out_shape=jax.ShapeDtypeStruct((Mp, Cout_p), out_dtype),
        grid_spec=pltpu.PrefetchScalarGridSpec(
            num_scalar_prefetch=0,
            grid=(grid_m,),
            in_specs=[
                pl.BlockSpec((TM, Kp), lambda i: (i, 0)),
                pl.BlockSpec((Kp, Cout_p), lambda i: (0, 0)),   # resident weights
                pl.BlockSpec((1, Cout_p), lambda i: (0, 0)),    # resident bias
            ],
            out_specs=pl.BlockSpec((TM, Cout_p), lambda i: (i, 0)),
        ),
        compiler_params=pltpu.CompilerParams(
            dimension_semantics=("parallel",),
            vmem_limit_bytes=vmem_limit),
        cost_estimate=cost,
    )(patches, w2, b2)

    out = out2d[:M, :Cout].reshape(N, Ho, Wo, Cout)
    return jnp.transpose(out, (0, 3, 1, 2))                       # back to NCHW


if __name__ == "__main__":
    # ZFNetConv(in_channels=4, out_channels=8, kernel_size=3, stride=2, padding=1)
    N, Cin, H, W = 2, 4, 16, 16
    Cout, KH, KW = 8, 3, 3
    stride = (2, 2)
    padding = (1, 1)

    key = jax.random.PRNGKey(0)
    kx, kw, kb = jax.random.split(key, 3)
    x = jax.random.normal(kx, (N, Cin, H, W), dtype=jnp.float32)
    weight = jax.random.normal(kw, (Cout, Cin, KH, KW), dtype=jnp.float32) * 0.1
    bias = jax.random.normal(kb, (Cout,), dtype=jnp.float32) * 0.1

    # Reference (same semantics as nn.Conv2d(bias=True) + ReLU).
    ref = jax.lax.conv_general_dilated(
        x, weight, window_strides=stride,
        padding=((padding[0], padding[0]), (padding[1], padding[1])),
        dimension_numbers=("NCHW", "OIHW", "NCHW"))
    ref = jnp.maximum(ref + bias.reshape(1, Cout, 1, 1), 0.0)

    # Full-precision path.
    y = zfnet_conv(x, weight, bias, stride, padding)
    jax.block_until_ready(y)
    assert y.shape == (N, Cout, 8, 8)
    assert jnp.allclose(y, ref, atol=1e-4, rtol=1e-4)

    # bf16 operand path (half the DMA bytes, f32 accumulate) -- looser tolerance.
    y_bf16 = zfnet_conv(x, weight, bias, stride, padding,
                        compute_dtype=jnp.bfloat16)
    jax.block_until_ready(y_bf16)
    assert y_bf16.shape == (N, Cout, 8, 8)
    assert jnp.allclose(y_bf16, ref, atol=5e-2, rtol=5e-2)

    print("KERNEL_OK")
</pallas_src>

<mosaic_0001>
module attributes {stable_mosaic.version = 11 : i64} {
  func.func @conv_relu_kernel(%arg0: i32, %arg1: memref<64x40xf32, #tpu.memory_space<vmem>>, %arg2: memref<40x128xf32, #tpu.memory_space<vmem>>, %arg3: memref<1x128xf32, #tpu.memory_space<vmem>>, %arg4: memref<64x128xf32, #tpu.memory_space<vmem>>) attributes {dimension_semantics = [#tpu.dimension_semantics<parallel>], iteration_bounds = array<i64: 2>, scalar_prefetch = 0 : i64, scratch_operands = 0 : i64, tpu.core_type = #tpu.core_type<tc>, window_params = [{transform_indices = @transform_0, window_bounds = array<i64: 64, 40>}, {pipeline_mode = #tpu.pipeline_mode<synchronous>, transform_indices = @transform_1, window_bounds = array<i64: 40, 128>}, {pipeline_mode = #tpu.pipeline_mode<synchronous>, transform_indices = @transform_2, window_bounds = array<i64: 1, 128>}, {transform_indices = @transform_3, window_bounds = array<i64: 64, 128>}]} {
    %c0 = arith.constant 0 : index
    %c0_0 = arith.constant 0 : index
    %0 = vector.load %arg1[%c0, %c0_0] : memref<64x40xf32, #tpu.memory_space<vmem>>, vector<64x40xf32>
    %c0_1 = arith.constant 0 : index
    %c0_2 = arith.constant 0 : index
    %1 = vector.load %arg2[%c0_1, %c0_2] : memref<40x128xf32, #tpu.memory_space<vmem>>, vector<40x128xf32>
    %cst = arith.constant dense<0.000000e+00> : vector<64x128xf32>
    %2 = tpu.matmul %0, %1, %cst {dimension_numbers = #tpu.dot_dimension_numbers<[1], [0], [0], [1], [0, 0, 1, 1], [], []>} : vector<64x40xf32>, vector<40x128xf32>, vector<64x128xf32> -> vector<64x128xf32>
    %c0_3 = arith.constant 0 : index
    %c0_4 = arith.constant 0 : index
    %3 = vector.load %arg3[%c0_3, %c0_4] : memref<1x128xf32, #tpu.memory_space<vmem>>, vector<1x128xf32>
    %4 = vector.broadcast %3 : vector<1x128xf32> to vector<64x128xf32>
    %5 = arith.addf %2, %4 : vector<64x128xf32>
    %cst_5 = arith.constant 0.000000e+00 : f32
    %6 = vector.broadcast %cst_5 : f32 to vector<64x128xf32>
    %7 = arith.maximumf %5, %6 : vector<64x128xf32>
    %c0_6 = arith.constant 0 : index
    %c0_7 = arith.constant 0 : index
    %8 = vector.load %arg4[%c0_6, %c0_7] : memref<64x128xf32, #tpu.memory_space<vmem>>, vector<64x128xf32>
    tpu.vector_store %arg4[%c0_6, %c0_7], %7 {strides = array<i32>} : memref<64x128xf32, #tpu.memory_space<vmem>>, vector<64x128xf32>,
    return
  }
  func.func @transform_0(%arg0: i32) -> (i32, i32) {
    %c0_i32 = arith.constant 0 : i32
    %c0_i32_0 = arith.constant 0 : i32
    return %arg0, %c0_i32 : i32, i32
  }
  func.func @transform_1(%arg0: i32) -> (i32, i32) {
    %c0_i32 = arith.constant 0 : i32
    %c0_i32_0 = arith.constant 0 : i32
    %c0_i32_1 = arith.constant 0 : i32
    return %c0_i32, %c0_i32_0 : i32, i32
  }
  func.func @transform_2(%arg0: i32) -> (i32, i32) {
    %c0_i32 = arith.constant 0 : i32
    %c0_i32_0 = arith.constant 0 : i32
    %c0_i32_1 = arith.constant 0 : i32
    return %c0_i32, %c0_i32_0 : i32, i32
  }
  func.func @transform_3(%arg0: i32) -> (i32, i32) {
    %c0_i32 = arith.constant 0 : i32
    %c0_i32_0 = arith.constant 0 : i32
    return %arg0, %c0_i32 : i32, i32
  }
}

</mosaic_0001>

<bundles_post_ra>
// kernel: tpu_custom_call.1
= control target key start
LH: loop header
LB: loop body
LE: loop exit
PB: predicated region body
PF: predicated region fallthrough
CT: control target
= control target key end

     0   :  { %8 = vsyncpa [#allocation3], 0  ;;  %s738_s0 = inlined_call_operand.vmem [shape: f32[128,40], index: 0, kind: input, shape index: {}]   ;;  %s739_s1 = inlined_call_operand.vmem [shape: f32[40,128], index: 1, kind: input, shape index: {}]   ;;  %s740_s2 = inlined_call_operand.vmem [shape: f32[1,128], index: 2, kind: input, shape index: {}]   ;;  %s741_s3 = inlined_call_operand.hbm [shape: f32[128,128], index: 3, kind: output, shape index: {}]  }
   0x1   :  { %10 = vsyncpa [#allocation3 + $0x1], 0  ;;  %s607_s12 = smov 0   ;;  %s609_s13 = smov 0  }
   0x2   :  { %s611_s14 = smov 0   ;;  %s613_s15 = smov 0  }
   0x3 LB: > { %s628_s16 = sadd.s32 4294967295, %s582_s15   ;;  %s414_s17 = sadd.s32 4294967294, %s582_s15   ;;  %s582_s15 = sphi %s613_s15, %s747_s15   ;;  %s578_s14 = sphi %s611_s14, %s746_s14   ;;  %s574_s13 = sphi %s609_s13, %s745_s13   ;;  %s570_s12 = sphi %s607_s12, %s744_s12  }
   0x4   : > { %s632_s18 = sadd.s32 1, %s582_s15   ;;  %s91_s19 = sadd.s32 1, %s578_s14 }
   0x5   : > { %s88_s20 = ssub.s32 %s582_s15, %s632_s18  ;;  %p101_p0 = scmp.ne.s32.totalorder %s578_s14, %s574_s13 }
   0x6   : > { %p89_p1 = scmp.eq.s32.totalorder %s88_s20, 0  ;;  %p102_p2 = scmp.eq.s32.totalorder %s628_s16, 1 }
   0x7   : > { %p107_p3 = scmp.ne.s32.totalorder %s574_s13, %s570_s12  ;;  %p108_p4 = scmp.eq.s32.totalorder %s414_s17, 1 }
   0x8   : > { %s643_s21 = scalar_select %p89_p1, %s578_s14, %s91_s19  }
   0x9   : > { %p645_p5 = por %p102_p2, %p101_p0  ;;  %p649_p6 = por %p108_p4, %p107_p3 }
   0xa   : > { %p417_p7 = scmp.ge.s32.totalorder %s582_s15, 1  ;;  %p141_p8 = scmp.lt.s32.totalorder %s582_s15, 3 }
   0xc   : > { %p142_p9 = pnand %p417_p7, %p141_p8 }
   0xd   : > { %s419_s28 = sshll.u32 (!%p142_p9), %s628_s16, 3  ;;  %s162_s17 = sand.u32 (!%p142_p9), 1, %s574_s13  }
   0xe   : > { %145 = sbr.rel (%p142_p9) target bundleno = 248 (0xf8), region = 32  ;;  %p166_p10 = scmp.lt.s32.totalorder (!%p142_p9), %s419_s28, 15 }
   0xf   : > { %s418_s24 = sshll.u32 (!%p142_p9), %s162_s17, 6  ;;  %s435_s26 = sshll.u32 (!%p142_p9), %s628_s16, 10 }
  0x10   : > { %s164_s25 = scalar_lea.vmem (!%p142_p9), [#allocation2], %s418_s24  ;;  %s692_s30 = scalar_lea.hbm (!%p142_p9), %s741_s3, %s435_s26 }
  0x11   : > { %s352_s27 = sshll.u32 (!%p142_p9), %s164_s25, 4  ;;  %s698_s16 = scalar_lea.sflag (!%p142_p9), [#allocation3], %s162_s17  ;;  %s694_s27 = int_to_ptr.vmem [resolvable:$true] %s352_s27 }
  0x12   : > { %s522_s4 = scalar_lea.vmem (!%p142_p9), %s694_s27, 1024  ;;  %s584_s5 = smov (!%p142_p9), [#allocation2]  }
  0x13   : > { %v184_v0 = vld [vmem:[%s739_s1 + $0x20] sm:$0xff]  ;;  %v183_v1 = vld [vmem:[%s739_s1 + $0x18] sm:$0xff]  ;;  %v182_v2 = vld [vmem:[%s739_s1 + $0x10] sm:$0xff]  ;;  %s749_s28 = smov (!%p166_p10, %s419_s28), 15  ;;  %vm192_vm0 = vcmask 326656   ;;  %p523_p11 = scmp.ne.s32.totalorder %s694_s27, %s522_s4 }
  0x14   : > { %449 = vmatprep.subr.mxu0 %v184_v0  ;;  %471 = vmatprep.subr.mxu1 %v184_v0  ;;  %v181_v3 = vld [vmem:[%s739_s1 + $0x8] sm:$0xff]  ;;  %s420_s6 = sshll.u32 %s749_s28, 3  ;;  %v180_v4 = vld [vmem:[%s739_s1] sm:$0xff] }
  0x15   : > { %450 = vmatpush3.msra.mxu0 %v184_v0  ;;  %476 = vmatpush3.msra.mxu1 %v184_v0  ;;  %s169_s11 = scalar_lea.vmem %s738_s0, %s420_s6  ;;  %v421_v13 = vld [vmem:[%s740_s2] ss:$0 sm:$0xff]  ;;  %p524_p12 = pnand %p523_p11, %p645_p5 }
  0x16   : > { %451 = vmatprep.subr.mxu0 %v183_v1  ;;  %472 = vmatprep.subr.mxu1 %v183_v1  ;;  %v172_v5 = vld [vmem:[%s169_s11] sm:$0xff]  ;;  %v173_v7 = vld [vmem:[%s169_s11 + $0x8] sm:$0xff]  ;;  %v174_v9 = vld [vmem:[%s169_s11 + $0x10] sm:$0xff]  ;;  %s526_s6 = sshll.u32 %s584_s5, 4  ;;  %s527_s6 = int_to_ptr.vmem [resolvable:$false] %s526_s6 }
  0x17   : > { %452 = vmatpush3.msra.mxu0 %v183_v1  ;;  %477 = vmatpush3.msra.mxu1 %v183_v1  ;;  %v176_v6 = vld [vmem:[%s169_s11 + $0x20] sm:$0xff]  ;;  %v177_v8 = vld [vmem:[%s169_s11 + $0x28] sm:$0xff]  ;;  %v178_v10 = vld [vmem:[%s169_s11 + $0x30] sm:$0xff]  ;;  %p525_p13 = pneg %p524_p12  ;;  %s528_s7 = scalar_lea.vmem %s527_s6, 2048 }
  0x18   : > { %453 = vmatprep.subr.mxu0 %v182_v2  ;;  %473 = vmatprep.subr.mxu1 %v182_v2  ;;  %v175_v11 = vld [vmem:[%s169_s11 + $0x18] sm:$0xff]  ;;  %p529_p0 = scmp.lt.s32.totalorder %s694_s27, %s527_s6  ;;  %p530_p1 = scmp.lt.s32.totalorder %s528_s7, %s522_s4 }
  0x19   : > { %454 = vmatpush3.msra.mxu0 %v182_v2  ;;  %478 = vmatpush3.msra.mxu1 %v182_v2  ;;  %v179_v12 = vld [vmem:[%s169_s11 + $0x38] sm:$0xff] }
  0x1a   : > { %455 = vmatprep.subr.mxu0 %v181_v3  ;;  %474 = vmatprep.subr.mxu1 %v181_v3  ;;  %p531_p2 = por %p530_p1, %p529_p0 }
  0x1b   : > { %456 = vmatpush3.msra.mxu0 %v181_v3  ;;  %479 = vmatpush3.msra.mxu1 %v181_v3 }
  0x1c   : > { %457 = vmatprep.subr.mxu0 %v180_v4  ;;  %475 = vmatprep.subr.mxu1 %v180_v4  ;;  %p532_p3 = pnand %p531_p2, %p525_p13 }
  0x1d   : > { %458 = vmatpush3.msra.mxu0 %v180_v4  ;;  %480 = vmatpush3.msra.mxu1 %v180_v4 }
  0x1e   : > { %459 = vmatprep.mubr.msk.f32.mxu0 %vm192_vm0, %v172_v5  ;;  %465 = vmatprep.mubr.msk.f32.mxu1 %vm192_vm0, %v176_v6 }
  0x1f   : > { %460 = vmatmul.mubr.msk.f32.vlgmr.msra.gmra.mxu0 %vm192_vm0, %v173_v7  ;;  %466 = vmatmul.mubr.msk.f32.vlgmr.msra.gmra.mxu1 %vm192_vm0, %v177_v8 }
  0x20   : > { %462 = vmatprep.mubr.msk.f32.mxu0 %vm192_vm0, %v174_v9  ;;  %468 = vmatprep.mubr.msk.f32.mxu1 %vm192_vm0, %v178_v10 }
  0x23   : > { %463 = vmatmul.mubr.msk.f32.gmra.mxu0 %vm192_vm0, %v175_v11  ;;  %469 = vmatmul.mubr.msk.f32.gmra.mxu1 %vm192_vm0, %v179_v12 }
  0xdf   : > { %v461_v14 = vpop.f32.mrf.mxu0  ;;  %v467_v15 = vpop.f32.mrf.mxu1 }
  0xe0   : > { %v289_v16 = vadd.f32 %v461_v14, %v421_v13  ;;  %v309_v17 = vadd.f32 %v467_v15, %v421_v13 }
  0xe1   : > { %v283_v18 = vpop.f32.mrf.mxu0  ;;  %v303_v19 = vpop.f32.mrf.mxu1 }
  0xe2   : > { %v323_v20 = vmax.f32 %v289_v16, 0.0  ;;  %v327_v21 = vmax.f32 %v309_v17, 0.0  ;;  %v284_v22 = vadd.f32 %v421_v13, %v283_v18  ;;  %v304_v23 = vadd.f32 %v421_v13, %v303_v19 }
  0xe3   : > { %v464_v24 = vpop.f32.mrf.mxu0  ;;  %v470_v25 = vpop.f32.mrf.mxu1 }
  0xe4   : > { %331 = vst [vmem:[%s164_s25 + $0x8] sm:$0xff] %v323_v20  ;;  %335 = vst [vmem:[%s164_s25 + $0x28] sm:$0xff] %v327_v21  ;;  %v322_v26 = vmax.f32 %v284_v22, 0.0  ;;  %v326_v27 = vmax.f32 %v304_v23, 0.0  ;;  %v299_v28 = vadd.f32 %v464_v24, %v421_v13  ;;  %v319_v29 = vadd.f32 %v470_v25, %v421_v13 }
  0xe5   : > { %v293_v30 = vpop.f32.mrf.mxu0  ;;  %v313_v31 = vpop.f32.mrf.mxu1 }
  0xe6   : > { %330 = vst [vmem:[%s164_s25] sm:$0xff] %v322_v26  ;;  %334 = vst [vmem:[%s164_s25 + $0x20] sm:$0xff] %v326_v27  ;;  %v325_v32 = vmax.f32 %v299_v28, 0.0  ;;  %v329_v33 = vmax.f32 %v319_v29, 0.0  ;;  %v294_v34 = vadd.f32 %v421_v13, %v293_v30  ;;  %v314_v35 = vadd.f32 %v421_v13, %v313_v31 }
  0xe8   : > { %333 = vst [vmem:[%s164_s25 + $0x18] sm:$0xff] %v325_v32  ;;  %337 = vst [vmem:[%s164_s25 + $0x38] sm:$0xff] %v329_v33  ;;  %v324_v36 = vmax.f32 %v294_v34, 0.0  ;;  %v328_v37 = vmax.f32 %v314_v35, 0.0 }
  0xea   : > { %332 = vst [vmem:[%s164_s25 + $0x10] sm:$0xff] %v324_v36  ;;  %336 = vst [vmem:[%s164_s25 + $0x30] sm:$0xff] %v328_v37 }
  0xeb   : > { %535 = shalt.err (!%p532_p3)
}
  0xec   : > { %s536_s8 = scalar_lea.hbm %s692_s30, 1024  ;;  %s540_s11 = scalar_lea.hbm %s741_s3, 2048 }
  0xed   : > { %p537_p4 = scmp.ne.s32.totalorder %s692_s30, %s536_s8  ;;  %p541_p9 = scmp.lt.s32.totalorder %s692_s30, %s741_s3 }
  0xee   : > { %p542_p10 = scmp.lt.s32.totalorder %s540_s11, %s536_s8 }
  0xef   : > { %p538_p7 = pnand %p537_p4, %p645_p5 }
  0xf0   : > { %p543_p11 = por %p542_p10, %p541_p9 }
  0xf1   : > { %p539_p8 = pneg %p538_p7 }
  0xf3   : > { %p544_p12 = pnand %p543_p11, %p539_p8 }
  0xf5   : > { %547 = shalt.err (!%p544_p12)
}
  0xf6   : > { %s585_s20 = smov 128   ;;  %s586_s24 = smov 8  }
  0xf7   : > { %481 = dma.vmem_to_hbm [thread:$0]  (%p645_p5), %s694_s27, 1024, %s692_s30, %s698_s16, %s585_s20, %s585_s20, %s586_s24  }
  0xf8 PF: > { %p487_p13 = scmp.ge.s32.totalorder %s582_s15, 2  ;;  %s367_s25 = sand.u32 1, %s570_s12  }
  0xf9   : > { %s368_s26 = scalar_lea.sflag [#allocation3], %s367_s25 }
  0xfa   : > { %p484_p0 = pnand %p487_p13, %p649_p6 }
  0xfc   : > { %p485_p1 = pneg %p484_p0 }
  0xfe   : > { %565 = dma.done.wait (%p485_p1), %s368_s26, 1024  }
  0xff   : > { %567 = vsyncadd (%p485_p1), %s368_s26, 4294966272  ;;  %p13_p2 = scmp.ge.s32.totalorder %s632_s18, 4   ;;  %s744_s12 = smov %s574_s13 }
 0x100   : > { %s745_s13 = smov %s578_s14  ;;  %s746_s14 = smov %s643_s21 }
 0x101   : > { %s747_s15 = smov %s632_s18  ;;  %15 = sbr.rel (!%p13_p2) target bundleno = 3 (0x3), region = 67 }
 0x106   :  { %373 = vsyncpa [#allocation3], 1 }
 0x107   :  { %375 = vsyncpa [#allocation3 + $0x1], 1 }

</bundles_post_ra>
